<compile_context>
chip_gen: v6e
topology: v6e:2x2x1
jax: 0.10.0
libtpu: 0.0.40
codegen_flags: <defaults>
</compile_context>

<pallas_src>
import functools
import math

import numpy as np

import jax
import jax.numpy as jnp
from jax.experimental import pallas as pl
from jax.experimental.pallas import tpu as pltpu

LANES = 128            # TPU vreg lane width
MAX_TILE_ROWS = 4096   # <= 2 MiB f32 input block per grid step


def _make_cmat(n_bins, pack):
    """Block-structured (128, 2*pack) reduction matrix, built once at trace time.

    Columns [0, pack)      : per-group indicator        -> denominator
    Columns [pack, 2*pack) : indicator * bin_index      -> numerator
    All entries (0..n_bins-1 and 1.0) are exactly representable in bf16.
    """
    lanes = pack * n_bins
    cmat = np.zeros((lanes, 2 * pack), dtype=np.float32)
    for g in range(pack):
        cmat[g * n_bins:(g + 1) * n_bins, g] = 1.0
        cmat[g * n_bins:(g + 1) * n_bins, pack + g] = np.arange(n_bins)
    return jnp.asarray(cmat, dtype=jnp.bfloat16)


def _integral_kernel(x_ref, c_ref, o_ref, *, pack):
    # x_ref: (tile_rows, 128)    -- each row packs `pack` independent n_bins-wide
    #                               distributions, lane-dense.
    # c_ref: (128, 2*pack) bf16  -- constant reduction matrix (VMEM-resident).
    # o_ref: (tile_rows, pack)   -- one expected value per packed distribution.
    x = x_ref[...].astype(jnp.float32)

    # Numerically-stable softmax: subtract the row-wide max (same constant for
    # every group in the row -> softmax unchanged; >= every group max -> no
    # overflow in exp).
    m = jnp.max(x, axis=-1, keepdims=True)              # XLU
    e = jnp.exp(x - m)                                   # EUP

    # One small single-pass bf16 MXU matmul does all per-group reductions
    # (f32 accumulation); MXU is otherwise idle.
    r = jnp.dot(e.astype(jnp.bfloat16), c_ref[...],
                preferred_element_type=jnp.float32)      # (tile_rows, 2*pack)
    den = r[:, :pack]
    num = r[:, pack:]

    # Expected value = num / den; approx reciprocal -> EUP slot (free).
    o_ref[...] = (num * pl.reciprocal(den, approx=True)).astype(o_ref.dtype)


def _pick_tile_rows(rows):
    """Row-tile size: <= MAX_TILE_ROWS, sublane-aligned, and (when splitting)
    an even number of grid steps so v7x's two TensorCores stay balanced."""
    if rows <= 1024:
        return rows                       # single step; not worth splitting
    num_steps = max(2, pl.cdiv(rows, MAX_TILE_ROWS))
    if num_steps % 2:
        num_steps += 1                    # even #steps -> balanced megacore split
    return pl.cdiv(pl.cdiv(rows, num_steps), 8) * 8


@functools.partial(jax.jit, static_argnames=("n_bins",))
def integral_forward(x, n_bins=16):
    """x: (..., n_bins) logits (f32 or bf16). Returns f32 of shape x.shape[:-1]."""
    assert x.shape[-1] == n_bins
    assert LANES % n_bins == 0, "n_bins must divide 128"
    pack = LANES // n_bins

    lead_shape = x.shape[:-1]
    m = math.prod(lead_shape)

    x2d = x.reshape(m, n_bins)
    m_pad = pl.cdiv(m, pack) * pack
    if m_pad != m:
        # TODO(synk): this pad is a full copy, but it is only hit when the row
        # count is not a multiple of 8 (never the case for real YOLO heads).
        x2d = jnp.pad(x2d, ((0, m_pad - m), (0, 0)))
    rows = m_pad // pack
    x_packed = x2d.reshape(rows, LANES)        # free: contiguous view

    cmat = _make_cmat(n_bins, pack)            # trace-time constant, 4 KiB

    tile_rows = _pick_tile_rows(rows)
    grid = (pl.cdiv(rows, tile_rows),)         # ragged final block masked by Pallas

    out = pl.pallas_call(
        functools.partial(_integral_kernel, pack=pack),
        out_shape=jax.ShapeDtypeStruct((rows, pack), jnp.float32),
        grid=grid,
        in_specs=[
            pl.BlockSpec((tile_rows, LANES), lambda i: (i, 0)),
            # Constant block index -> stays VMEM-resident across the grid.
            pl.BlockSpec((LANES, 2 * pack), lambda i: (0, 0)),
        ],
        out_specs=pl.BlockSpec((tile_rows, pack), lambda i: (i, 0)),
        compiler_params=pltpu.CompilerParams(
            dimension_semantics=("parallel",),
            vmem_limit_bytes=32 * 1024 * 1024,
        ),
    )(x_packed, cmat)

    # (rows, pack) row-major flatten restores the original row order.
    return out.reshape(m_pad)[:m].reshape(lead_shape)


def _reference(x, n_bins=16):
    project = jnp.linspace(0.0, n_bins - 1, n_bins, dtype=jnp.float32)
    p = jax.nn.softmax(x.astype(jnp.float32), axis=-1)
    return jnp.sum(p * project, axis=-1)


if __name__ == "__main__":
    n_bins = 16
    key = jax.random.PRNGKey(0)

    # Primary small example: (batch=2, anchors=8, 4 box sides, 16 bins).
    x = jax.random.normal(key, (2, 8, 4, n_bins), dtype=jnp.float32)
    out = jax.block_until_ready(integral_forward(x, n_bins=n_bins))
    ref = _reference(x, n_bins)
    assert out.shape == x.shape[:-1]
    assert jnp.allclose(out, ref, atol=2e-2, rtol=1e-2), (
        f"max abs err = {jnp.max(jnp.abs(out - ref))}")

    # Extra coverage: multi-step grid with ragged final tile (YOLO-sized M),
    # wrapper pad path (rows % 8 != 0), and bf16 logits.
    extra = [
        ((1, 8400, 4, n_bins), jnp.float32),   # grid=2 (even split), ragged tail
        ((3, 7, 5, n_bins), jnp.float32),      # M not a multiple of 8 -> pad
        ((2, 8, 4, n_bins), jnp.bfloat16),     # bf16 input path
    ]
    for shape, dtype in extra:
        key, sub = jax.random.split(key)
        xs = (jax.random.normal(sub, shape, dtype=jnp.float32) * 4.0).astype(dtype)
        o = jax.block_until_ready(integral_forward(xs, n_bins=n_bins))
        r = _reference(xs, n_bins)
        assert o.shape == shape[:-1]
        assert jnp.allclose(o, r, atol=3e-2, rtol=2e-2), (
            f"{shape} {dtype}: max abs err = {jnp.max(jnp.abs(o - r))}")

    print("KERNEL_OK")
</pallas_src>

<mosaic_0001>
module attributes {stable_mosaic.version = 11 : i64} {
  func.func @_integral_kernel(%arg0: i32, %arg1: memref<8x128xf32, #tpu.memory_space<vmem>>, %arg2: memref<128x16xbf16, #tpu.memory_space<vmem>>, %arg3: memref<8x8xf32, #tpu.memory_space<vmem>>) attributes {dimension_semantics = [#tpu.dimension_semantics<parallel>], iteration_bounds = array<i64: 1>, scalar_prefetch = 0 : i64, scratch_operands = 0 : i64, tpu.core_type = #tpu.core_type<tc>, window_params = [{transform_indices = @transform_0, window_bounds = array<i64: 8, 128>}, {pipeline_mode = #tpu.pipeline_mode<synchronous>, transform_indices = @transform_1, window_bounds = array<i64: 128, 16>}, {transform_indices = @transform_2, window_bounds = array<i64: 8, 8>}]} {
    %c0 = arith.constant 0 : index
    %c0_0 = arith.constant 0 : index
    %0 = vector.load %arg1[%c0, %c0_0] : memref<8x128xf32, #tpu.memory_space<vmem>>, vector<8x128xf32>
    %cst = arith.constant dense<0xFF800000> : vector<8xf32>
    %1 = vector.multi_reduction <maximumf>, %0, %cst [1] : vector<8x128xf32> to vector<8xf32>
    %2 = vector.shape_cast %1 : vector<8xf32> to vector<8x1xf32>
    %3 = vector.broadcast %2 : vector<8x1xf32> to vector<8x128xf32>
    %4 = arith.subf %0, %3 : vector<8x128xf32>
    %5 = math.exp %4 : vector<8x128xf32>
    %6 = arith.truncf %5 : vector<8x128xf32> to vector<8x128xbf16>
    %c0_1 = arith.constant 0 : index
    %c0_2 = arith.constant 0 : index
    %7 = vector.load %arg2[%c0_1, %c0_2] : memref<128x16xbf16, #tpu.memory_space<vmem>>, vector<128x16xbf16>
    %cst_3 = arith.constant dense<0.000000e+00> : vector<8x16xf32>
    %8 = tpu.matmul %6, %7, %cst_3 {dimension_numbers = #tpu.dot_dimension_numbers<[1], [0], [0], [1], [0, 0, 1, 1], [], []>} : vector<8x128xbf16>, vector<128x16xbf16>, vector<8x16xf32> -> vector<8x16xf32>
    %9 = vector.extract_strided_slice %8 {offsets = [0, 0], sizes = [8, 8], strides = [1, 1]} : vector<8x16xf32> to vector<8x8xf32>
    %10 = vector.extract_strided_slice %8 {offsets = [0, 8], sizes = [8, 8], strides = [1, 1]} : vector<8x16xf32> to vector<8x8xf32>
    %11 = tpu.reciprocal %9 {approx = true} : vector<8x8xf32> -> vector<8x8xf32>
    %12 = arith.mulf %10, %11 : vector<8x8xf32>
    %c0_4 = arith.constant 0 : index
    %c0_5 = arith.constant 0 : index
    %13 = vector.load %arg3[%c0_4, %c0_5] : memref<8x8xf32, #tpu.memory_space<vmem>>, vector<8x8xf32>
    tpu.vector_store %arg3[%c0_4, %c0_5], %12 {strides = array<i32>} : memref<8x8xf32, #tpu.memory_space<vmem>>, vector<8x8xf32>,
    return
  }
  func.func @transform_0(%arg0: i32) -> (i32, i32) {
    %c0_i32 = arith.constant 0 : i32
    %c0_i32_0 = arith.constant 0 : i32
    return %arg0, %c0_i32 : i32, i32
  }
  func.func @transform_1(%arg0: i32) -> (i32, i32) {
    %c0_i32 = arith.constant 0 : i32
    %c0_i32_0 = arith.constant 0 : i32
    %c0_i32_1 = arith.constant 0 : i32
    return %c0_i32, %c0_i32_0 : i32, i32
  }
  func.func @transform_2(%arg0: i32) -> (i32, i32) {
    %c0_i32 = arith.constant 0 : i32
    %c0_i32_0 = arith.constant 0 : i32
    return %arg0, %c0_i32 : i32, i32
  }
}

</mosaic_0001>

<bundles_post_ra>
// kernel: integral_forward.1
= control target key start
LH: loop header
LB: loop body
LE: loop exit
PB: predicated region body
PF: predicated region fallthrough
CT: control target
= control target key end

     0   :  { %v192_v1 = vmov 0.0   ;;  %vm193_vm0 = vmmov 0   ;;  %s194_s26 = smov 8   ;;  %vm133_vm1 = vcmask 64512   ;;  %s241_s0 = inlined_call_operand.vmem [shape: f32[8,128], index: 0, kind: input, shape index: {}]   ;;  %s242_s1 = inlined_call_operand.vmem [shape: bf16[128,16], index: 1, kind: input, shape index: {}]   ;;  %s243_s2 = inlined_call_operand.vmem [shape: f32[8,8], index: 2, kind: output, shape index: {}]  }
   0x1   :  { %v12_v0 = vld [vmem:[%s241_s0] sm:$0xff]  ;;  %156 = vmatprep.subr.bf16.mxu0 %v192_v1  ;;  %v180_v2 = vld [vmem:[%s242_s1 + $0x38] sm:$0xff]   ;;  %v181_v3 = vld [vmem:[%s242_s1 + $0x30] sm:$0xff]   ;;  %172 = vmatprep.mubr.msk.bf16.mxu0 %vm193_vm0, %v192_v1 }
   0x2   :  { %13 = vmax.xlane.f32.xlu0 %v12_v0  ;;  %157 = vmatpush3.bf16.msra.mxu0 %v180_v2  ;;  %v182_v4 = vld [vmem:[%s242_s1 + $0x28] sm:$0xff]   ;;  %v183_v5 = vld [vmem:[%s242_s1 + $0x20] sm:$0xff]   ;;  %v184_v6 = vld [vmem:[%s242_s1 + $0x18] sm:$0xff]  }
   0x3   :  { %158 = vmatprep.subr.bf16.mxu0 %v192_v1  ;;  %v185_v7 = vld [vmem:[%s242_s1 + $0x10] sm:$0xff]   ;;  %v186_v8 = vld [vmem:[%s242_s1 + $0x8] sm:$0xff]   ;;  %v187_v9 = vld [vmem:[%s242_s1] sm:$0xff]   ;;  %s195_s1 = smov 120  }
   0x6   :  { %159 = vmatpush3.bf16.msra.mxu0 %v181_v3 }
   0x7   :  { %160 = vmatprep.subr.bf16.mxu0 %v192_v1 }
   0xa   :  { %161 = vmatpush3.bf16.msra.mxu0 %v182_v4 }
   0xb   :  { %162 = vmatprep.subr.bf16.mxu0 %v192_v1 }
   0xe   :  { %163 = vmatpush3.bf16.msra.mxu0 %v183_v5 }
   0xf   :  { %164 = vmatprep.subr.bf16.mxu0 %v192_v1 }
  0x12   :  { %165 = vmatpush3.bf16.msra.mxu0 %v184_v6 }
  0x13   :  { %166 = vmatprep.subr.bf16.mxu0 %v192_v1 }
  0x16   :  { %167 = vmatpush3.bf16.msra.mxu0 %v185_v7 }
  0x17   :  { %168 = vmatprep.subr.bf16.mxu0 %v192_v1 }
  0x1a   :  { %169 = vmatpush3.bf16.msra.mxu0 %v186_v8 }
  0x1b   :  { %170 = vmatprep.subr.bf16.mxu0 %v192_v1 }
  0x1e   :  { %171 = vmatpush3.bf16.msra.mxu0 %v187_v9 }
  0x8b   :  { %v14_v10 = vpop.xlane.xlu0 %13 }
  0x8c   :  { %v15_v11 = vsub.f32 %v12_v0, %v14_v10 }
  0x8e   :  { %v16_v12 = vmul.f32 1.442695, %v15_v11 }
  0x90   :  { %188 = vpow2.f32 %v16_v12 }
  0x9d   :  { %v189_v13 = vpop.eup %188 }
  0x9e   :  { %v18_v14 = vpack.c.bf16 %v189_v13, %v189_v13 }
  0xa0   :  { %173 = vmatmul.mubr.bf16.vlgmr.msra.gmra.mxu0 %v18_v14 }
 0x160   :  { %v117_v15 = vpop.f32.mrf.mxu0 }
 0x161   :  { %190 = vrcp.f32 %v117_v15 }
 0x162   :  { %v174_v16 = vpop.f32.mrf.mxu0 }
 0x164   :  { %v120_v17 = vpop.f32.mrf.mxu0 }
 0x166   :  { %v175_v18 = vpop.f32.mrf.mxu0 }
 0x16e   :  { %v191_v19 = vpop.eup %190 }
 0x16f   :  { %125 = vrot.lane.b32.xlu0 %v191_v19, %s194_s26 }
 0x1e1   :  { %v126_v20 = vpop.permute.xlu0 %125 }
 0x1e2   :  { %v128_v21 = vmul.f32 %v126_v20, %v117_v15 }
 0x1e4   :  { %130 = vrot.lane.b32.xlu1 %v128_v21, %s195_s1 }
 0x256   :  { %v131_v22 = vpop.permute.xlu1 %130 }
 0x257   :  { %134 = vst.msk [vmem:[%s243_s2] sm:$0xff] %vm133_vm1, %v131_v22 }

</bundles_post_ra>
